<compile_context>
chip_gen: v6e
topology: v6e:2x2x1
jax: 0.10.0
libtpu: 0.0.40
codegen_flags: <defaults>
</compile_context>

<pallas_src>
import functools

import jax
import jax.numpy as jnp
from jax.experimental import pallas as pl
from jax.experimental.pallas import tpu as pltpu

_LANE = 128


def _cdiv(a, b):
    return -(-a // b)


def _round_up(x, m):
    return _cdiv(x, m) * m


def _sublane(itemsize):
    # 32-bit dtypes need sublane multiples of 8, 16-bit of 16, 8-bit of 32.
    return max(8, 32 // int(itemsize))


def _tpu_config():
    """Return (tensorcores_per_chip, max_block_bytes, vmem_limit_bytes)."""
    vmem = 0
    try:
        vmem = int(pltpu.get_tpu_info().vmem_capacity_bytes)
    except Exception:
        pass
    if 0 < vmem <= (64 << 20):
        # v7x-class: 64 MiB VMEM per TensorCore, 2 TCs/chip, ~3.2 TB/s HBM.
        # Larger blocks amortize the ~0.35 us per-grid-step overhead; two
        # 16 MiB double-buffered inputs + tiny output leave >20 MiB headroom.
        return 2, 16 << 20, 40 << 20
    # v5e/v6e-class: 128 MiB physical VMEM, single TensorCore per chip.
    # 8 MiB blocks are already ~94% of the HBM roofline there.
    return 1, 8 << 20, 32 << 20


def _gap_kernel(x_ref, o_ref, *, inv_hw):
    """Whole H*W in one block: one f32 sum + reciprocal-constant scale."""
    s = jnp.sum(x_ref[...], axis=-1, keepdims=True, dtype=jnp.float32)
    o_ref[...] = (s * inv_hw).astype(o_ref.dtype)


def _gap_kernel_hw_tiled(x_ref, o_ref, acc_ref, *, inv_hw, hw, hw_tile, ragged_hw):
    """H*W tiled over an 'arbitrary' reduction axis; f32 accumulator in VMEM."""
    k = pl.program_id(1)

    @pl.when(k == 0)
    def _():
        acc_ref[...] = jnp.zeros_like(acc_ref)

    x = x_ref[...]
    if ragged_hw:
        # Lanes past hw in the last (partial) block are unspecified data and
        # must not enter the sum.
        col = jax.lax.broadcasted_iota(jnp.int32, x.shape, 1) + k * hw_tile
        x = jnp.where(col < hw, x, jnp.zeros_like(x))
    acc_ref[...] += jnp.sum(x, axis=-1, keepdims=True, dtype=jnp.float32)

    @pl.when(k == pl.num_programs(1) - 1)
    def _():
        o_ref[...] = (acc_ref[...] * inv_hw).astype(o_ref.dtype)


def global_avg_pool2d(x, *, max_block_bytes=None, vmem_limit_bytes=None):
    """x: (N, C, H, W) -> (N, C, 1, 1), mean over H and W (F.avg_pool2d(x, (H, W)))."""
    N, C, H, W = x.shape
    rows = N * C
    hw = H * W
    itemsize = jnp.dtype(x.dtype).itemsize
    sublane = _sublane(itemsize)

    num_cores, default_block, default_vmem = _tpu_config()
    if max_block_bytes is None:
        max_block_bytes = default_block
    if vmem_limit_bytes is None:
        vmem_limit_bytes = default_vmem

    x2 = x.reshape(rows, hw)
    inv_hw = 1.0 / float(hw)

    # VMEM pads the lane (last) dim up to a multiple of 128 (e.g. 7x7 -> 128),
    # so the budget is computed against the padded width.
    lanes_padded = _round_up(hw, _LANE)
    bytes_per_row = lanes_padded * itemsize
    max_rows_fit = (max_block_bytes // bytes_per_row) // sublane * sublane

    cost = pl.CostEstimate(
        flops=rows * hw,
        transcendentals=0,
        bytes_accessed=rows * hw * itemsize + rows * itemsize,
    )

    if max_rows_fit >= sublane:
        # ---- Path A: whole H*W per block; grid over row tiles only. ----
        row_tile = min(max_rows_fit, _round_up(rows, sublane))
        num_tiles = _cdiv(rows, row_tile)

        if num_cores > 1:
            # Prefer an even number (>=2) of balanced grid steps so the
            # 'parallel' rows axis splits evenly across the two TensorCores.
            slabs = _cdiv(rows, sublane)
            if slabs >= 2:
                max_g = max(1, max_rows_fit // sublane)
                nt = max(2, 2 * _cdiv(_cdiv(slabs, max_g), 2))
                for _ in range(64):
                    if nt > slabs:
                        break
                    g = _cdiv(slabs, nt)
                    if g <= max_g and _cdiv(slabs, g) % 2 == 0:
                        row_tile = g * sublane
                        break
                    nt += 2
                num_tiles = _cdiv(rows, row_tile)

        out2 = pl.pallas_call(
            functools.partial(_gap_kernel, inv_hw=inv_hw),
            out_shape=jax.ShapeDtypeStruct((rows, 1), x.dtype),
            grid_spec=pltpu.PrefetchScalarGridSpec(
                num_scalar_prefetch=0,
                grid=(num_tiles,),
                in_specs=[pl.BlockSpec((row_tile, hw), lambda i: (i, 0))],
                out_specs=pl.BlockSpec((row_tile, 1), lambda i: (i, 0)),
            ),
            compiler_params=pltpu.CompilerParams(
                dimension_semantics=("parallel",),
                vmem_limit_bytes=vmem_limit_bytes,
            ),
            cost_estimate=cost,
        )(x2)
    else:
        # ---- Path B: H*W too wide even for a minimum-sublane slab.
        # Tile H*W on an 'arbitrary' (last) grid axis and accumulate in f32.
        row_tile = min(_round_up(rows, sublane), 8 * sublane)
        hw_tile = (max_block_bytes // (row_tile * itemsize)) // _LANE * _LANE
        hw_tile = max(_LANE, min(hw_tile, lanes_padded))
        num_row_tiles = _cdiv(rows, row_tile)
        num_hw_tiles = _cdiv(hw, hw_tile)
        ragged_hw = (hw % hw_tile) != 0

        out2 = pl.pallas_call(
            functools.partial(
                _gap_kernel_hw_tiled,
                inv_hw=inv_hw, hw=hw, hw_tile=hw_tile, ragged_hw=ragged_hw,
            ),
            out_shape=jax.ShapeDtypeStruct((rows, 1), x.dtype),
            grid_spec=pltpu.PrefetchScalarGridSpec(
                num_scalar_prefetch=0,
                grid=(num_row_tiles, num_hw_tiles),
                in_specs=[pl.BlockSpec((row_tile, hw_tile), lambda i, k: (i, k))],
                out_specs=pl.BlockSpec((row_tile, 1), lambda i, k: (i, 0)),
                scratch_shapes=[pltpu.VMEM((row_tile, 1), jnp.float32)],
            ),
            compiler_params=pltpu.CompilerParams(
                dimension_semantics=("parallel", "arbitrary"),
                vmem_limit_bytes=vmem_limit_bytes,
            ),
            cost_estimate=cost,
        )(x2)

    return out2.reshape(N, C, 1, 1)


if __name__ == "__main__":
    key = jax.random.PRNGKey(0)

    # Primary example (matches the module's expected NCHW input).
    N, C, H, W = 2, 4, 16, 16
    x = jax.random.normal(key, (N, C, H, W), dtype=jnp.float32)
    out = global_avg_pool2d(x)
    jax.block_until_ready(out)
    ref = jnp.mean(x, axis=(2, 3), keepdims=True)
    assert out.shape == (N, C, 1, 1), out.shape
    assert jnp.allclose(out, ref, atol=1e-5, rtol=1e-5), "mismatch vs reference"

    # Odd spatial size (7x7) with many channels.
    x2 = jax.random.normal(jax.random.PRNGKey(1), (2, 192, 7, 7), dtype=jnp.float32)
    out2 = global_avg_pool2d(x2)
    jax.block_until_ready(out2)
    ref2 = jnp.mean(x2, axis=(2, 3), keepdims=True)
    assert out2.shape == (2, 192, 1, 1), out2.shape
    assert jnp.allclose(out2, ref2, atol=1e-5, rtol=1e-5), "mismatch vs reference (7x7)"

    # Ragged last row block (rows=200 with a small forced block budget):
    # exercises Pallas' masked boundary stores with no host-side padding.
    x3 = jax.random.normal(jax.random.PRNGKey(2), (2, 100, 7, 7), dtype=jnp.float32)
    out3 = global_avg_pool2d(x3, max_block_bytes=16 << 10)
    jax.block_until_ready(out3)
    ref3 = jnp.mean(x3, axis=(2, 3), keepdims=True)
    assert jnp.allclose(out3, ref3, atol=1e-5, rtol=1e-5), "mismatch vs reference (ragged rows)"

    # Force the hw-tiled (two-axis, f32-accumulator, lane-masked) path with a
    # tiny block budget so it is exercised at small shapes.
    x4 = jax.random.normal(jax.random.PRNGKey(3), (1, 8, 64, 40), dtype=jnp.float32)
    out4 = global_avg_pool2d(x4, max_block_bytes=64 << 10)
    jax.block_until_ready(out4)
    ref4 = jnp.mean(x4, axis=(2, 3), keepdims=True)
    assert jnp.allclose(out4, ref4, atol=1e-5, rtol=1e-5), "mismatch vs reference (hw-tiled)"

    print("KERNEL_OK")
</pallas_src>

<mosaic_0001>
module attributes {stable_mosaic.version = 11 : i64} {
  func.func @_gap_kernel(%arg0: i32, %arg1: memref<8x256xf32, #tpu.memory_space<vmem>>, %arg2: memref<8x1xf32, #tpu.memory_space<vmem>>) attributes {dimension_semantics = [#tpu.dimension_semantics<parallel>], iteration_bounds = array<i64: 1>, scalar_prefetch = 0 : i64, scratch_operands = 0 : i64, tpu.core_type = #tpu.core_type<tc>, window_params = [{transform_indices = @transform_0, window_bounds = array<i64: 8, 256>}, {transform_indices = @transform_1, window_bounds = array<i64: 8, 1>}]} {
    %c0 = arith.constant 0 : index
    %c0_0 = arith.constant 0 : index
    %0 = vector.load %arg1[%c0, %c0_0] : memref<8x256xf32, #tpu.memory_space<vmem>>, vector<8x256xf32>
    %cst = arith.constant dense<0.000000e+00> : vector<8xf32>
    %1 = vector.multi_reduction <add>, %0, %cst [1] : vector<8x256xf32> to vector<8xf32>
    %2 = vector.shape_cast %1 : vector<8xf32> to vector<8x1xf32>
    %cst_1 = arith.constant 3.906250e-03 : f32
    %3 = vector.broadcast %cst_1 : f32 to vector<8x1xf32>
    %4 = arith.mulf %2, %3 : vector<8x1xf32>
    %c0_2 = arith.constant 0 : index
    %c0_3 = arith.constant 0 : index
    %5 = vector.load %arg2[%c0_2, %c0_3] : memref<8x1xf32, #tpu.memory_space<vmem>>, vector<8x1xf32>
    tpu.vector_store %arg2[%c0_2, %c0_3], %4 {strides = array<i32>} : memref<8x1xf32, #tpu.memory_space<vmem>>, vector<8x1xf32>,
    return
  }
  func.func @transform_0(%arg0: i32) -> (i32, i32) {
    %c0_i32 = arith.constant 0 : i32
    %c0_i32_0 = arith.constant 0 : i32
    return %arg0, %c0_i32 : i32, i32
  }
  func.func @transform_1(%arg0: i32) -> (i32, i32) {
    %c0_i32 = arith.constant 0 : i32
    %c0_i32_0 = arith.constant 0 : i32
    return %arg0, %c0_i32 : i32, i32
  }
}

</mosaic_0001>

<bundles_post_ra>
// kernel: tpu_custom_call.1
= control target key start
LH: loop header
LB: loop body
LE: loop exit
PB: predicated region body
PF: predicated region fallthrough
CT: control target
= control target key end

     0   :  { %6 = vsyncpa [#allocation3], 0  ;;  %s56_s6 = smov [#allocation2]   ;;  %s73_s0 = inlined_call_operand.hbm [shape: f32[8,256], index: 0, kind: input, shape index: {}]   ;;  %s74_s1 = inlined_call_operand.vmem [shape: f32[8,1], index: 1, kind: output, shape index: {}]  }
   0x1   :  { %s13_s7 = sshll.u32 %s56_s6, 4  ;;  %s14_s7 = int_to_ptr.vmem [resolvable:$true] %s13_s7 }
   0x2   :  { %s42_s8 = scalar_lea.vmem %s14_s7, 256  ;;  %p47_p1 = scmp.lt.s32.totalorder %s14_s7, %s14_s7 }
   0x3   :  { %p43_p0 = scmp.ne.s32.totalorder %s14_s7, %s42_s8  ;;  %p48_p2 = scmp.lt.s32.totalorder %s42_s8, %s42_s8 }
   0x5   :  { %p49_p3 = por %p48_p2, %p47_p1 }
   0x7   :  { %p50_p4 = pnand %p49_p3, %p43_p0 }
   0x9   :  { %53 = shalt.err (!%p50_p4)
}
   0xa   :  { %16 = dma.hbm_to_vmem [thread:$0]  %s73_s0, 256, %s14_s7, [#allocation3]  }
   0xb   :  { %54 = dma.done.wait [#allocation3], 256  }
   0xc   :  { %55 = vsyncadd [#allocation3], 4294967040  ;;  %v20_v0 = vld [vmem:[#allocation2] sm:$0xff]  ;;  %v21_v1 = vld [vmem:[#allocation2 + $0x8] sm:$0xff]  ;;  %vm26_vm0 = vcmask 7168  }
   0xd   :  { %v22_v2 = vadd.f32 %v21_v1, %v20_v0 }
   0xf   :  { %23 = vadd.xlane.f32.xlu0 %v22_v2 }
  0x98   :  { %v24_v3 = vpop.xlane.xlu0 %23 }
  0x99   :  { %v25_v4 = vmul.f32 0.00390625, %v24_v3 }
  0x9b   :  { %27 = vst.msk [vmem:[%s74_s1] sm:$0xff] %vm26_vm0, %v25_v4 }
  0x9c   :  { %32 = vsyncpa [#allocation3], 1 }

</bundles_post_ra>
